<compile_context>
chip_gen: v6e
topology: v6e:2x2x1
jax: 0.10.0
libtpu: 0.0.40
codegen_flags: <defaults>
</compile_context>

<pallas_src>
import functools

import jax
import jax.numpy as jnp
from jax import lax
from jax.experimental import pallas as pl
from jax.experimental.pallas import tpu as pltpu

_EPS = 1e-6  # torch F.pairwise_distance default eps


def _triplet_loss_kernel(a_ref, p_ref, n_ref, out_ref, acc_ref, *,
                         margin, n_rows, tile_rows):
    i = pl.program_id(0)

    @pl.when(i == 0)
    def _init():
        acc_ref[0] = 0.0

    a = a_ref[...].astype(jnp.float32)   # (TN, D)
    p = p_ref[...].astype(jnp.float32)
    n = n_ref[...].astype(jnp.float32)

    dp = a - p + _EPS
    dn = a - n + _EPS
    d_pos = jnp.sqrt(jnp.sum(dp * dp, axis=-1, keepdims=True))   # (TN, 1)
    d_neg = jnp.sqrt(jnp.sum(dn * dn, axis=-1, keepdims=True))   # (TN, 1)

    losses = jnp.maximum(d_pos - d_neg + margin, 0.0)            # (TN, 1)

    # Mask rows of the final (possibly padded) tile that fall past the true batch size.
    row = i * tile_rows + lax.broadcasted_iota(jnp.int32, losses.shape, 0)
    losses = jnp.where(row < n_rows, losses, 0.0)

    acc_ref[0] += jnp.sum(losses)

    @pl.when(i == pl.num_programs(0) - 1)
    def _finalize():
        out_ref[0, 0] = acc_ref[0] * (1.0 / n_rows)


def triplet_loss(anchor, positive, negative, margin=1.0, block_rows=None):
    n, d = anchor.shape
    assert positive.shape == (n, d) and negative.shape == (n, d)

    if block_rows is None:
        # ~2 MiB per input per pipeline buffer: 3 inputs x 2 buffers ~= 12 MiB total,
        # comfortably within v7x's 64 MiB physical / 32 MiB scoped VMEM.
        bytes_per_row = d * jnp.dtype(anchor.dtype).itemsize
        target_rows = max(8, (2 * 1024 * 1024) // max(bytes_per_row, 1))
        if n <= target_rows:
            block_rows = n                                 # whole batch in one tile
        else:
            block_rows = max(8, (target_rows // 8) * 8)    # keep (8, 128) tiling happy
    tn = block_rows
    grid = (pl.cdiv(n, tn),)
    # TODO(synk): for very large D also tile the feature axis (per-row partial squared
    # sums in a VMEM lane accumulator; cross-lane reduce + sqrt + hinge on last D step).

    kernel = functools.partial(_triplet_loss_kernel, margin=float(margin),
                               n_rows=n, tile_rows=tn)

    out = pl.pallas_call(
        kernel,
        out_shape=jax.ShapeDtypeStruct((1, 1), jnp.float32),
        grid_spec=pltpu.PrefetchScalarGridSpec(
            num_scalar_prefetch=0,
            grid=grid,
            in_specs=[
                pl.BlockSpec((tn, d), lambda i: (i, 0)),
                pl.BlockSpec((tn, d), lambda i: (i, 0)),
                pl.BlockSpec((tn, d), lambda i: (i, 0)),
            ],
            out_specs=pl.BlockSpec(memory_space=pltpu.SMEM),
            scratch_shapes=[pltpu.SMEM((1,), jnp.float32)],
        ),
        compiler_params=pltpu.CompilerParams(
            dimension_semantics=("arbitrary",),   # reduction axis -> resident accumulator
            vmem_limit_bytes=32 * 1024 * 1024,
        ),
    )(anchor, positive, negative)
    return out[0, 0]


def _reference(anchor, positive, negative, margin=1.0):
    a = anchor.astype(jnp.float32)
    p = positive.astype(jnp.float32)
    n = negative.astype(jnp.float32)
    d_pos = jnp.sqrt(jnp.sum((a - p + _EPS) ** 2, axis=-1))
    d_neg = jnp.sqrt(jnp.sum((a - n + _EPS) ** 2, axis=-1))
    return jnp.mean(jnp.maximum(d_pos - d_neg + margin, 0.0))


if __name__ == "__main__":
    key = jax.random.PRNGKey(0)
    k1, k2, k3, k4, k5, k6 = jax.random.split(key, 6)

    # Case 1: small shape implied by the module (batch=8, features=32), single tile.
    N, D = 8, 32
    a1 = jax.random.normal(k1, (N, D), dtype=jnp.float32)
    p1 = jax.random.normal(k2, (N, D), dtype=jnp.float32)
    n1 = jax.random.normal(k3, (N, D), dtype=jnp.float32)
    loss1 = jax.block_until_ready(triplet_loss(a1, p1, n1, margin=1.0))
    ref1 = _reference(a1, p1, n1, margin=1.0)
    assert jnp.allclose(loss1, ref1, rtol=1e-5, atol=1e-5), (loss1, ref1)

    # Case 2: exercise multi-tile streaming + ragged last-tile mask + non-default margin.
    N2, D2 = 20, 32
    a2 = jax.random.normal(k4, (N2, D2), dtype=jnp.float32)
    p2 = jax.random.normal(k5, (N2, D2), dtype=jnp.float32)
    n2 = jax.random.normal(k6, (N2, D2), dtype=jnp.float32)
    loss2 = jax.block_until_ready(triplet_loss(a2, p2, n2, margin=0.5, block_rows=8))
    ref2 = _reference(a2, p2, n2, margin=0.5)
    assert jnp.allclose(loss2, ref2, rtol=1e-5, atol=1e-5), (loss2, ref2)

    print("KERNEL_OK")
</pallas_src>

<mosaic_0001>
module attributes {stable_mosaic.version = 11 : i64} {
  func.func @_triplet_loss_kernel(%arg0: i32, %arg1: memref<8x32xf32, #tpu.memory_space<vmem>>, %arg2: memref<8x32xf32, #tpu.memory_space<vmem>>, %arg3: memref<8x32xf32, #tpu.memory_space<vmem>>, %arg4: memref<1x1xf32, #tpu.memory_space<smem>>, %arg5: memref<1xf32, #tpu.memory_space<smem>>) attributes {dimension_semantics = [#tpu.dimension_semantics<arbitrary>], iteration_bounds = array<i64: 1>, scalar_prefetch = 0 : i64, scratch_operands = 1 : i64, tpu.core_type = #tpu.core_type<tc>, window_params = [{transform_indices = @transform_0, window_bounds = array<i64: 8, 32>}, {transform_indices = @transform_1, window_bounds = array<i64: 8, 32>}, {transform_indices = @transform_2, window_bounds = array<i64: 8, 32>}, {transform_indices = @transform_3, window_bounds = array<i64: 1, 1>}]} {
    %c0_i32 = arith.constant 0 : i32
    %0 = arith.cmpi eq, %arg0, %c0_i32 : i32
    %1 = arith.extui %0 : i1 to i32
    %c0_i32_0 = arith.constant 0 : i32
    %2 = arith.cmpi ne, %1, %c0_i32_0 : i32
    scf.if %2 {
      %cst_18 = arith.constant 0.000000e+00 : f32
      %c0_19 = arith.constant 0 : index
      %43 = memref.load %arg5[%c0_19] : memref<1xf32, #tpu.memory_space<smem>>
      memref.store %cst_18, %arg5[%c0_19] : memref<1xf32, #tpu.memory_space<smem>>
    } else {
    }
    %c0 = arith.constant 0 : index
    %c0_1 = arith.constant 0 : index
    %3 = vector.load %arg1[%c0, %c0_1] : memref<8x32xf32, #tpu.memory_space<vmem>>, vector<8x32xf32>
    %c0_2 = arith.constant 0 : index
    %c0_3 = arith.constant 0 : index
    %4 = vector.load %arg2[%c0_2, %c0_3] : memref<8x32xf32, #tpu.memory_space<vmem>>, vector<8x32xf32>
    %c0_4 = arith.constant 0 : index
    %c0_5 = arith.constant 0 : index
    %5 = vector.load %arg3[%c0_4, %c0_5] : memref<8x32xf32, #tpu.memory_space<vmem>>, vector<8x32xf32>
    %6 = arith.subf %3, %4 : vector<8x32xf32>
    %cst = arith.constant 9.99999997E-7 : f32
    %7 = vector.broadcast %cst : f32 to vector<8x32xf32>
    %8 = arith.addf %6, %7 : vector<8x32xf32>
    %9 = arith.subf %3, %5 : vector<8x32xf32>
    %cst_6 = arith.constant 9.99999997E-7 : f32
    %10 = vector.broadcast %cst_6 : f32 to vector<8x32xf32>
    %11 = arith.addf %9, %10 : vector<8x32xf32>
    %12 = arith.mulf %8, %8 : vector<8x32xf32>
    %cst_7 = arith.constant dense<0.000000e+00> : vector<8xf32>
    %13 = vector.multi_reduction <add>, %12, %cst_7 [1] : vector<8x32xf32> to vector<8xf32>
    %14 = vector.shape_cast %13 : vector<8xf32> to vector<8x1xf32>
    %15 = math.sqrt %14 : vector<8x1xf32>
    %16 = arith.mulf %11, %11 : vector<8x32xf32>
    %cst_8 = arith.constant dense<0.000000e+00> : vector<8xf32>
    %17 = vector.multi_reduction <add>, %16, %cst_8 [1] : vector<8x32xf32> to vector<8xf32>
    %18 = vector.shape_cast %17 : vector<8xf32> to vector<8x1xf32>
    %19 = math.sqrt %18 : vector<8x1xf32>
    %20 = arith.subf %15, %19 : vector<8x1xf32>
    %cst_9 = arith.constant 1.000000e+00 : f32
    %21 = vector.broadcast %cst_9 : f32 to vector<8x1xf32>
    %22 = arith.addf %20, %21 : vector<8x1xf32>
    %cst_10 = arith.constant 0.000000e+00 : f32
    %23 = vector.broadcast %cst_10 : f32 to vector<8x1xf32>
    %24 = arith.maximumf %22, %23 : vector<8x1xf32>
    %c8_i32 = arith.constant 8 : i32
    %25 = arith.muli %arg0, %c8_i32 : i32
    %26 = tpu.iota {dimensions = array<i32: 0>} : vector<8x1xi32>
    %27 = vector.broadcast %25 : i32 to vector<8x1xi32>
    %28 = arith.addi %27, %26 : vector<8x1xi32>
    %c8_i32_11 = arith.constant 8 : i32
    %29 = vector.broadcast %c8_i32_11 : i32 to vector<8x1xi32>
    %30 = arith.cmpi slt, %28, %29 : vector<8x1xi32>
    %cst_12 = arith.constant 0.000000e+00 : f32
    %31 = vector.broadcast %cst_12 : f32 to vector<8x1xf32>
    %32 = arith.select %30, %24, %31 : vector<8x1xi1>, vector<8x1xf32>
    %c0_13 = arith.constant 0 : index
    %33 = memref.load %arg5[%c0_13] : memref<1xf32, #tpu.memory_space<smem>>
    %34 = vector.shape_cast %32 : vector<8x1xf32> to vector<1x8x1xf32>
    %cst_14 = arith.constant dense<0.000000e+00> : vector<1xf32>
    %35 = vector.multi_reduction <add>, %34, %cst_14 [1, 2] : vector<1x8x1xf32> to vector<1xf32>
    %36 = vector.shape_cast %35 : vector<1xf32> to vector<1x1x1xf32>
    %37 = vector.extract %36[0, 0, 0] : f32 from vector<1x1x1xf32>
    %38 = arith.addf %33, %37 : f32
    %c0_15 = arith.constant 0 : index
    %39 = memref.load %arg5[%c0_15] : memref<1xf32, #tpu.memory_space<smem>>
    memref.store %38, %arg5[%c0_15] : memref<1xf32, #tpu.memory_space<smem>>
    %c0_i32_16 = arith.constant 0 : i32
    %40 = arith.cmpi eq, %arg0, %c0_i32_16 : i32
    %41 = arith.extui %40 : i1 to i32
    %c0_i32_17 = arith.constant 0 : i32
    %42 = arith.cmpi ne, %41, %c0_i32_17 : i32
    scf.if %42 {
      %c0_18 = arith.constant 0 : index
      %43 = memref.load %arg5[%c0_18] : memref<1xf32, #tpu.memory_space<smem>>
      %cst_19 = arith.constant 1.250000e-01 : f32
      %44 = arith.mulf %43, %cst_19 : f32
      %c0_20 = arith.constant 0 : index
      %c0_21 = arith.constant 0 : index
      %45 = memref.load %arg4[%c0_20, %c0_21] : memref<1x1xf32, #tpu.memory_space<smem>>
      memref.store %44, %arg4[%c0_20, %c0_21] : memref<1x1xf32, #tpu.memory_space<smem>>
    } else {
    }
    return
  }
  func.func @transform_0(%arg0: i32) -> (i32, i32) {
    %c0_i32 = arith.constant 0 : i32
    %c0_i32_0 = arith.constant 0 : i32
    return %arg0, %c0_i32 : i32, i32
  }
  func.func @transform_1(%arg0: i32) -> (i32, i32) {
    %c0_i32 = arith.constant 0 : i32
    %c0_i32_0 = arith.constant 0 : i32
    return %arg0, %c0_i32 : i32, i32
  }
  func.func @transform_2(%arg0: i32) -> (i32, i32) {
    %c0_i32 = arith.constant 0 : i32
    %c0_i32_0 = arith.constant 0 : i32
    return %arg0, %c0_i32 : i32, i32
  }
  func.func @transform_3(%arg0: i32) -> (i32, i32) {
    %c0_i32 = arith.constant 0 : i32
    %c0_i32_0 = arith.constant 0 : i32
    %c0_i32_1 = arith.constant 0 : i32
    return %c0_i32, %c0_i32_0 : i32, i32
  }
}

</mosaic_0001>

<bundles_post_ra>
// kernel: tpu_custom_call.1
= control target key start
LH: loop header
LB: loop body
LE: loop exit
PB: predicated region body
PF: predicated region fallthrough
CT: control target
= control target key end

     0   :  { %8 = vsyncpa [#allocation4], 0  ;;  %s253_s0 = inlined_call_operand.hbm [shape: f32[8,32], index: 0, kind: input, shape index: {}]   ;;  %s254_s1 = inlined_call_operand.hbm [shape: f32[8,32], index: 1, kind: input, shape index: {}]   ;;  %s255_s2 = inlined_call_operand.hbm [shape: f32[8,32], index: 2, kind: input, shape index: {}]   ;;  %s256_s3 = inlined_call_operand.hbm [shape: f32[1,1], index: 3, kind: output, shape index: {}]  }
   0x1   :  { %9 = vsyncpa [#allocation7], 0 }
   0x2   :  { %10 = vsyncpa [#allocation5], 0  ;;  %s217_s12 = smov [#allocation6]   ;;  %s218_s14 = smov [#allocation3]  }
   0x3   :  { %s27_s13 = sshll.u32 %s217_s12, 4  ;;  %s17_s15 = sshll.u32 %s218_s14, 4  ;;  %s28_s13 = int_to_ptr.vmem [resolvable:$true] %s27_s13  ;;  %s18_s15 = int_to_ptr.vmem [resolvable:$true] %s17_s15 }
   0x4   :  { %s151_s16 = scalar_lea.vmem %s28_s13, 128  ;;  %p156_p1 = scmp.lt.s32.totalorder %s28_s13, %s28_s13 }
   0x5   :  { %p152_p0 = scmp.ne.s32.totalorder %s28_s13, %s151_s16  ;;  %p157_p2 = scmp.lt.s32.totalorder %s151_s16, %s151_s16 }
   0x7   :  { %p158_p3 = por %p157_p2, %p156_p1 }
   0x9   :  { %p159_p4 = pnand %p158_p3, %p152_p0 }
   0xb   :  { %162 = shalt.err (!%p159_p4)
}
   0xc   :  { %30 = dma.hbm_to_vmem [thread:$0]  %s254_s1, 128, %s28_s13, [#allocation7]  }
   0xd   :  { %s171_s19 = scalar_lea.vmem %s18_s15, 128  ;;  %p176_p6 = scmp.lt.s32.totalorder %s18_s15, %s18_s15 }
   0xe   :  { %p172_p5 = scmp.ne.s32.totalorder %s18_s15, %s171_s19  ;;  %p177_p7 = scmp.lt.s32.totalorder %s171_s19, %s171_s19 }
  0x10   :  { %p178_p8 = por %p177_p7, %p176_p6 }
  0x12   :  { %p179_p9 = pnand %p178_p8, %p172_p5 }
  0x14   :  { %182 = shalt.err (!%p179_p9)
}
  0x15   :  { %20 = dma.hbm_to_vmem [thread:$0]  %s253_s0, 128, %s18_s15, [#allocation4]  }
  0x16   :  { %s219_s22 = smov [#allocation8]  }
  0x17   :  { %s37_s23 = sshll.u32 %s219_s22, 4  ;;  %s38_s23 = int_to_ptr.vmem [resolvable:$true] %s37_s23 }
  0x18   :  { %s191_s24 = scalar_lea.vmem %s38_s23, 128  ;;  %p196_p11 = scmp.lt.s32.totalorder %s38_s23, %s38_s23 }
  0x19   :  { %p192_p10 = scmp.ne.s32.totalorder %s38_s23, %s191_s24  ;;  %p197_p12 = scmp.lt.s32.totalorder %s191_s24, %s191_s24 }
  0x1b   :  { %p198_p13 = por %p197_p12, %p196_p11 }
  0x1d   :  { %p199_p0 = pnand %p198_p13, %p192_p10 }
  0x1f   :  { %202 = shalt.err (!%p199_p0)
}
  0x20   :  { %40 = dma.hbm_to_vmem [thread:$0]  %s255_s2, 128, %s38_s23, [#allocation7]  }
  0x21   :  { %211 = dma.done.wait [#allocation4], 128  }
  0x22   :  { %212 = vsyncadd [#allocation4], 4294967168 }
  0x23   :  { %213 = dma.done.wait [#allocation7], 256  }
  0x24   :  { %214 = vsyncadd [#allocation7], 4294967040  ;;  %v56_v0 = vld [vmem:[#allocation3] sm:$0xff]  ;;  %v57_v1 = vld [vmem:[#allocation6] sm:$0xff]  ;;  %vm64_vm0 = vcmask 261120   ;;  %vm97_vm5 = vcmask 7168  }
  0x25   :  { %v58_v2 = vld [vmem:[#allocation8] sm:$0xff]  ;;  %v59_v3 = vsub.f32 %v56_v0, %v57_v1  ;;  %s220_s26 = smov [#allocation9]  }
  0x26   :  { %v61_v4 = vsub.f32 %v56_v0, %v58_v2 }
  0x27   :  { %v60_v5 = vadd.f32 1e-06, %v59_v3 }
  0x28   :  { %v62_v6 = vadd.f32 1e-06, %v61_v4 }
  0x29   :  { %v63_v7 = vmul.f32 %v60_v5, %v60_v5 }
  0x2a   :  { %v75_v8 = vmul.f32 %v62_v6, %v62_v6 }
  0x2b   :  { %v65_v9 = vsel %vm64_vm0, %v63_v7, 0.0 }
  0x2c   :  { %66 = vadd.xlane.f32.xlu0 %v65_v9  ;;  %v76_v10 = vsel %vm64_vm0, %v75_v8, 0.0 }
  0x30   :  { %77 = vadd.xlane.f32.xlu0 %v76_v10 }
  0xb5   :  { %v67_v11 = vpop.xlane.xlu0 %66 }
  0xb6   :  { %139 = vrsqrt.f32 %v67_v11  ;;  %vm70_vm1 = vcmp.eq.f32.partialorder %v67_v11, inf  ;;  %v73_v18 = vand.u32 2147483648, %v67_v11  ;;  %vm72_vm3 = vcmp.eq.f32.partialorder %v67_v11, 0.0 }
  0xb9   :  { %v78_v12 = vpop.xlane.xlu0 %77 }
  0xba   :  { %141 = vrsqrt.f32 %v78_v12  ;;  %vm81_vm2 = vcmp.eq.f32.partialorder %v78_v12, inf  ;;  %v84_v19 = vand.u32 2147483648, %v78_v12  ;;  %vm83_vm4 = vcmp.eq.f32.partialorder %v78_v12, 0.0 }
  0xc3   :  { %v140_v13 = vpop.eup %139 }
  0xc4   :  { %v69_v14 = vmul.f32 %v140_v13, %v67_v11 }
  0xc6   :  { %v71_v17 = vsel %vm70_vm1, %v67_v11, %v69_v14 }
  0xc7   :  { %v142_v15 = vpop.eup %141  ;;  %v74_v21 = vsel %vm72_vm3, %v73_v18, %v71_v17 }
  0xc8   :  { %v80_v16 = vmul.f32 %v142_v15, %v78_v12 }
  0xca   :  { %v82_v20 = vsel %vm81_vm2, %v78_v12, %v80_v16 }
  0xcb   :  { %v85_v22 = vsel %vm83_vm4, %v84_v19, %v82_v20 }
  0xcc   :  { %v86_v23 = vsub.f32 %v74_v21, %v85_v22 }
  0xce   :  { %v87_v24 = vadd.f32 1.0, %v86_v23 }
  0xd0   :  { %v88_v25 = vmax.f32 %v87_v24, 0.0 }
  0xd2   :  { %v98_v26 = vsel %vm97_vm5, %v88_v25, 0.0 }
  0xd3   :  { %99 = vadd.xlane.f32.xlu1 %v98_v26 }
 0x15c   :  { %v100_v27 = vpop.xlane.xlu1 %99 }
 0x15d   :  { %v101_v28 = vrot.slane %v100_v27, 4 }
 0x15f   :  { %v102_v29 = vadd.f32 %v101_v28, %v100_v27 }
 0x161   :  { %v103_v30 = vrot.slane %v102_v29, 2 }
 0x163   :  { %v104_v31 = vadd.f32 %v103_v30, %v102_v29 }
 0x165   :  { %v105_v32 = vrot.slane %v104_v31, 1 }
 0x167   :  { %v106_v33 = vadd.f32 %v105_v32, %v104_v31 }
 0x169   :  { %133 = vpush %v106_v33 }
 0x19a   :  { %s134_s0 = spop %133 }
 0x19b   :  { %s115_s2 = smul.f32 0.125, %s134_s0 }
 0x19d   :  { %117 = sst [smem:[#allocation9]] %s115_s2 }
 0x19e   :  { %125 = dma.smem_to_hbm %s220_s26, 16, %s256_s3, [#allocation5]  }
 0x19f   :  { %215 = dma.done.wait [#allocation5], 16  }
 0x1a0   :  { %216 = vsyncadd [#allocation5], 4294967280 }
 0x1a1   :  { %129 = sfence }
 0x1a2   :  { %130 = vsyncpa [#allocation4], 1 }
 0x1a3   :  { %131 = vsyncpa [#allocation7], 1 }
 0x1a4   :  { %132 = vsyncpa [#allocation5], 1 }

</bundles_post_ra>
